<compile_context>
chip_gen: v7x
topology: tpu7x:2x2x1
jax: 0.10.0
libtpu: 0.0.40
codegen_flags: <defaults>
</compile_context>

<pallas_src>
import functools
import math

import jax
import jax.numpy as jnp
from jax.experimental import pallas as pl
from jax.experimental.pallas import tpu as pltpu

EPS = 1e-3                     # nn.BatchNorm2d(eps=0.001)
LANE = 128                     # TPU lane width


def _round_up(v, m):
    return ((v + m - 1) // m) * m


def _pick_rows_tile(rows, target):
    """Largest divisor of `rows` <= target that is sublane friendly."""
    for d in range(min(rows, max(target, 1)), 0, -1):
        if rows % d == 0 and (d % 8 == 0 or d == rows):
            return d
    return rows


def _pick_th(H, W, cmax, fs, p_list, budget, N):
    """Largest divisor of H compatible with all halo widths whose per-step
    VMEM footprint fits the budget; keeps >= 2 grid steps for v7x megacore.
    TODO(synk): prime H degrades to th=H (single slab) or tiny divisors."""
    pmax = max(p_list)

    def ok(th):
        if H % th:
            return False
        if th != H:
            for p in p_list:
                if p and th % p:
                    return False
        return True

    def step_bytes(th):
        slab = (th + 2 * pmax) * (W + 2 * pmax) * cmax * 2
        core = th * W * cmax * 2
        halo = 2 * pmax * W * cmax * 2
        outb = th * W * cmax * 4
        resid = th * W * cmax * 2
        patch = th * W * fs * cmax * 2
        acc = th * W * cmax * 4
        wts = (fs * fs + 1) * cmax * cmax * 2
        return (2 * (core + halo + outb + resid) + slab
                + 2 * (patch + acc) + 2 * wts + (2 << 20))

    divisors = [d for d in range(H, 0, -1) if ok(d)]
    th = next((d for d in divisors if step_bytes(d) <= budget), divisors[-1])
    if N * (H // th) < 2:                       # keep both v7x TCs busy
        smaller = [d for d in divisors if d < th]
        if smaller:
            th = smaller[0]
    return th


# --------------------------------------------------------------------------
# pass 1: per-channel partial sums for BN1 batch statistics (unpadded input)
# --------------------------------------------------------------------------
def _stats_kernel(x_ref, out_ref):
    x = x_ref[...]                                        # (tr, W*Cin) f32
    out_ref[0, 0:1, :] = jnp.sum(x, axis=0, keepdims=True)
    out_ref[0, 1:2, :] = jnp.sum(x * x, axis=0, keepdims=True)


# --------------------------------------------------------------------------
# shared body: folded-BN affine + ReLU into a zero-haloed VMEM slab, then the
# conv as `fs` grouped (one kernel row each) bf16 MXU matmuls, f32 accumulation
# --------------------------------------------------------------------------
def _bn_relu_conv_acc(core, top, bot, scale_ref, shift_ref, w_ref, act_ref,
                      *, fs, dil, th, W, p, n_slabs):
    i = pl.program_id(1)
    c = act_ref.shape[-1]

    def bn_relu(v):
        return jnp.maximum(v.astype(jnp.float32) * scale_ref[...]
                           + shift_ref[...], 0.0).astype(jnp.bfloat16)

    # left / right column halo strips are always outside the image -> zero.
    zcol = jnp.zeros((th + 2 * p, p, c), jnp.bfloat16)
    act_ref[:, 0:p, :] = zcol
    act_ref[:, p + W:, :] = zcol

    # core rows (BlockSpec-pipelined input).
    act_ref[p:p + th, p:p + W, :] = bn_relu(core)

    # top / bottom halo rows: real neighbour rows, zeroed at the image border.
    a_top = bn_relu(top)
    a_bot = bn_relu(bot)
    act_ref[0:p, p:p + W, :] = jnp.where(i > 0, a_top, jnp.zeros_like(a_top))
    act_ref[th + p:, p:p + W, :] = jnp.where(i < n_slabs - 1, a_bot,
                                             jnp.zeros_like(a_bot))

    # grouped im2col: one matmul per kernel row (K = fs*c, >= 256 for c=128);
    # peak patch VMEM is 1/fs of a full fs*fs im2col.
    co = w_ref.shape[-1]
    acc = jnp.zeros((th * W, co), jnp.float32)
    for ki in range(fs):
        taps = [act_ref[ki * dil:ki * dil + th, kj * dil:kj * dil + W, :]
                for kj in range(fs)]
        patch = jnp.concatenate(taps, axis=-1).reshape(th * W, fs * c)
        acc = acc + jnp.dot(patch, w_ref[ki],
                            preferred_element_type=jnp.float32)
    return acc                                            # (th*W, co) f32


# --------------------------------------------------------------------------
# pass 2: unit1 (BN1 apply + ReLU + dilated conv) + BN2 partial stats
# --------------------------------------------------------------------------
def _unit1_kernel(xc_ref, xt_ref, xb_ref, scale_ref, shift_ref, w_ref, b_ref,
                  h1_ref, stats_ref, act_ref, *, fs, dil, th, W, p, n_slabs):
    acc = _bn_relu_conv_acc(xc_ref[0], xt_ref[0], xb_ref[0], scale_ref,
                            shift_ref, w_ref, act_ref,
                            fs=fs, dil=dil, th=th, W=W, p=p, n_slabs=n_slabs)
    h = acc + b_ref[...]                                  # (th*W, Cpo) f32
    h1_ref[...] = h.astype(jnp.bfloat16).reshape(1, th, W, h.shape[-1])
    # partial per-channel sums for BatchNorm2 (one-pass variance), from f32 h.
    stats_ref[0, 0, 0:1, :] = jnp.sum(h, axis=0, keepdims=True)
    stats_ref[0, 0, 1:2, :] = jnp.sum(h * h, axis=0, keepdims=True)


# --------------------------------------------------------------------------
# pass 3: unit2 (BN2 apply + ReLU + conv) + residual add
# --------------------------------------------------------------------------
def _unit2_kernel(hc_ref, ht_ref, hb_ref, scale_ref, shift_ref, w_ref, b_ref,
                  xres_ref, *rest, fs, th, W, p, n_slabs, use_eq):
    if use_eq:
        weq_ref, beq_ref, out_ref, act_ref = rest
    else:
        out_ref, act_ref = rest

    acc = _bn_relu_conv_acc(hc_ref[0], ht_ref[0], hb_ref[0], scale_ref,
                            shift_ref, w_ref, act_ref,
                            fs=fs, dil=1, th=th, W=W, p=p, n_slabs=n_slabs)
    acc = acc + b_ref[...]

    xr = xres_ref[0].reshape(th * W, xres_ref.shape[-1])  # bf16
    if use_eq:
        # 1x1 channel-matching conv as a bf16 MXU matmul, f32 accumulation.
        acc = acc + jnp.dot(xr, weq_ref[...],
                            preferred_element_type=jnp.float32) + beq_ref[...]
    else:
        acc = acc + xr.astype(jnp.float32)
    out_ref[...] = acc.reshape(1, th, W, acc.shape[-1])


# --------------------------------------------------------------------------
# wrapper
# --------------------------------------------------------------------------
def basic_block_forward(x_nchw, params, *, filter_size=3, dilation=1):
    """BasicBlock forward (training-mode batch-stat BN). NCHW float32 in/out."""
    x = jnp.transpose(x_nchw, (0, 2, 3, 1)).astype(jnp.float32)   # -> NHWC
    N, H, W, Cin = x.shape
    Cout = params["w2"].shape[-1]
    fs = filter_size
    assert fs % 2 == 1 and fs >= 3, "odd filter size >= 3 expected ('same' conv)"
    p1 = ((fs - 1) * dilation) // 2          # 'same' padding, unit-1 (dilated)
    p2 = (fs - 1) // 2                       # 'same' padding, unit-2
    assert 0 < p1 < H and 0 < p2 < H
    use_eq = Cin != Cout

    Cpi = _round_up(Cin, LANE)               # lane-dense channel padding (MXU)
    Cpo = _round_up(Cout, LANE)
    cnt = float(N * H * W)

    # ---- generation-aware VMEM budget (v7x: 64 MiB/TC, v5e/v6e: 128 MiB) ----
    try:
        vmem_cap = int(pltpu.get_tpu_info().vmem_capacity_bytes)
    except Exception:
        vmem_cap = 64 * 1024 * 1024
    vmem_limit = max(min(vmem_cap * 3 // 4, 100 * 1024 * 1024), 32 * 1024 * 1024)
    budget = int(vmem_limit * 0.7)

    th = _pick_th(H, W, max(Cpi, Cpo), fs, (p1, p2), budget, N)
    n_slabs = H // th

    # ---------------- pass 1: BN1 batch statistics (unpadded input) ---------
    rows = N * H
    wc = W * Cin
    tr = _pick_rows_tile(rows, max((8 << 20) // (wc * 4), 8))
    part1 = pl.pallas_call(
        _stats_kernel,
        grid=(rows // tr,),
        in_specs=[pl.BlockSpec((tr, wc), lambda i: (i, 0))],
        out_specs=pl.BlockSpec((1, 2, wc), lambda i: (i, 0, 0)),
        out_shape=jax.ShapeDtypeStruct((rows // tr, 2, wc), jnp.float32),
        compiler_params=pltpu.CompilerParams(
            dimension_semantics=("parallel",),
            vmem_limit_bytes=vmem_limit),
    )(x.reshape(rows, wc))
    tot1 = jnp.sum(part1, axis=0).reshape(2, W, Cin).sum(axis=1)   # (2, Cin)
    mean1 = tot1[0] / cnt
    var1 = tot1[1] / cnt - mean1 * mean1     # one-pass variance (f32)
    rs1 = jax.lax.rsqrt(var1 + EPS)
    g1 = params["g1"].astype(jnp.float32)
    be1 = params["be1"].astype(jnp.float32)
    scale1 = jnp.pad(g1 * rs1, (0, Cpi - Cin)).reshape(1, Cpi)
    shift1 = jnp.pad(be1 - mean1 * g1 * rs1, (0, Cpi - Cin)).reshape(1, Cpi)

    # single bf16 lane-padded copy of x: unit-1 conv input + pass-3 residual.
    x_bf = jnp.pad(x, ((0, 0), (0, 0), (0, 0), (0, Cpi - Cin))).astype(jnp.bfloat16)

    def pad_conv_w(w, ci, co):   # (fs,fs,Ci,Co) HWIO -> (fs, fs*ci, co) bf16
        k = w.shape[0]
        wp = jnp.zeros((k, k, ci, co), jnp.float32)
        wp = wp.at[:, :, :w.shape[2], :w.shape[3]].set(w.astype(jnp.float32))
        return wp.reshape(k, k * ci, co).astype(jnp.bfloat16)

    w1 = pad_conv_w(params["w1"], Cpi, Cpo)
    b1 = jnp.pad(params["b1"].astype(jnp.float32), (0, Cpo - Cout)).reshape(1, Cpo)

    common = pltpu.CompilerParams(
        dimension_semantics=("parallel", "parallel"),
        vmem_limit_bytes=vmem_limit)

    # ---------------- pass 2: unit1 + BN2 partial stats ---------------------
    thp1 = max(th // p1, 1)
    nb1 = max(H // p1, 1)
    flops1 = 2 * N * H * W * fs * fs * Cpi * Cpo
    bytes1 = 2 * N * H * W * (Cpi + Cpo) + 2 * int(w1.size) + 8 * N * n_slabs * Cpo
    h1, stats2 = pl.pallas_call(
        functools.partial(_unit1_kernel, fs=fs, dil=dilation, th=th, W=W,
                          p=p1, n_slabs=n_slabs),
        grid=(N, n_slabs),
        in_specs=[
            pl.BlockSpec((1, th, W, Cpi), lambda n, i: (n, i, 0, 0)),       # core
            pl.BlockSpec((1, p1, W, Cpi),                                   # top halo
                         lambda n, i: (n, jnp.maximum(i * thp1 - 1, 0), 0, 0)),
            pl.BlockSpec((1, p1, W, Cpi),                                   # bottom halo
                         lambda n, i: (n, jnp.minimum((i + 1) * thp1, nb1 - 1), 0, 0)),
            pl.BlockSpec((1, Cpi), lambda n, i: (0, 0)),                    # scale1
            pl.BlockSpec((1, Cpi), lambda n, i: (0, 0)),                    # shift1
            pl.BlockSpec((fs, fs * Cpi, Cpo), lambda n, i: (0, 0, 0)),      # w1
            pl.BlockSpec((1, Cpo), lambda n, i: (0, 0)),                    # b1
        ],
        out_specs=[
            pl.BlockSpec((1, th, W, Cpo), lambda n, i: (n, i, 0, 0)),
            pl.BlockSpec((1, 1, 2, Cpo), lambda n, i: (n, i, 0, 0)),
        ],
        out_shape=[
            jax.ShapeDtypeStruct((N, H, W, Cpo), jnp.bfloat16),             # h1 in bf16
            jax.ShapeDtypeStruct((N, n_slabs, 2, Cpo), jnp.float32),
        ],
        scratch_shapes=[pltpu.VMEM((th + 2 * p1, W + 2 * p1, Cpi), jnp.bfloat16)],
        compiler_params=common,
        cost_estimate=pl.CostEstimate(flops=flops1, transcendentals=0,
                                      bytes_accessed=bytes1),
    )(x_bf, x_bf, x_bf, scale1, shift1, w1, b1)

    tot2 = jnp.sum(stats2, axis=(0, 1))                   # (2, Cpo)
    mean2 = tot2[0] / cnt
    var2 = tot2[1] / cnt - mean2 * mean2
    rs2 = jax.lax.rsqrt(var2 + EPS)
    g2 = jnp.pad(params["g2"].astype(jnp.float32), (0, Cpo - Cout))
    be2 = jnp.pad(params["be2"].astype(jnp.float32), (0, Cpo - Cout))
    scale2 = (g2 * rs2).reshape(1, Cpo)
    shift2 = (be2 - mean2 * g2 * rs2).reshape(1, Cpo)

    w2 = pad_conv_w(params["w2"], Cpo, Cpo)
    b2 = jnp.pad(params["b2"].astype(jnp.float32), (0, Cpo - Cout)).reshape(1, Cpo)

    # ---------------- pass 3: unit2 + residual -------------------------------
    thp2 = max(th // p2, 1)
    nb2 = max(H // p2, 1)
    in_specs3 = [
        pl.BlockSpec((1, th, W, Cpo), lambda n, i: (n, i, 0, 0)),           # h1 core
        pl.BlockSpec((1, p2, W, Cpo),
                     lambda n, i: (n, jnp.maximum(i * thp2 - 1, 0), 0, 0)),
        pl.BlockSpec((1, p2, W, Cpo),
                     lambda n, i: (n, jnp.minimum((i + 1) * thp2, nb2 - 1), 0, 0)),
        pl.BlockSpec((1, Cpo), lambda n, i: (0, 0)),                        # scale2
        pl.BlockSpec((1, Cpo), lambda n, i: (0, 0)),                        # shift2
        pl.BlockSpec((fs, fs * Cpo, Cpo), lambda n, i: (0, 0, 0)),          # w2
        pl.BlockSpec((1, Cpo), lambda n, i: (0, 0)),                        # b2
        pl.BlockSpec((1, th, W, Cpi), lambda n, i: (n, i, 0, 0)),           # residual x
    ]
    args3 = [h1, h1, h1, scale2, shift2, w2, b2, x_bf]
    if use_eq:                                            # only plumb the 1x1 conv if needed
        weq = jnp.zeros((Cpi, Cpo), jnp.float32)
        weq = weq.at[:Cin, :Cout].set(params["weq"].astype(jnp.float32))
        weq = weq.astype(jnp.bfloat16)
        beq = jnp.pad(params["beq"].astype(jnp.float32), (0, Cpo - Cout)).reshape(1, Cpo)
        in_specs3 += [pl.BlockSpec((Cpi, Cpo), lambda n, i: (0, 0)),
                      pl.BlockSpec((1, Cpo), lambda n, i: (0, 0))]
        args3 += [weq, beq]

    flops2 = 2 * N * H * W * fs * fs * Cpo * Cpo
    if use_eq:
        flops2 += 2 * N * H * W * Cpi * Cpo
    bytes2 = 2 * N * H * W * (Cpo + Cpi) + 4 * N * H * W * Cpo + 2 * int(w2.size)
    out_p = pl.pallas_call(
        functools.partial(_unit2_kernel, fs=fs, th=th, W=W, p=p2,
                          n_slabs=n_slabs, use_eq=use_eq),
        grid=(N, n_slabs),
        in_specs=in_specs3,
        out_specs=pl.BlockSpec((1, th, W, Cpo), lambda n, i: (n, i, 0, 0)),
        out_shape=jax.ShapeDtypeStruct((N, H, W, Cpo), jnp.float32),
        scratch_shapes=[pltpu.VMEM((th + 2 * p2, W + 2 * p2, Cpo), jnp.bfloat16)],
        compiler_params=common,
        cost_estimate=pl.CostEstimate(flops=flops2, transcendentals=0,
                                      bytes_accessed=bytes2),
    )(*args3)

    out = out_p[..., :Cout]                               # drop channel padding
    return jnp.transpose(out, (0, 3, 1, 2))               # -> NCHW


# ------------------------- parameter init (deterministic) -------------------------
def kaiming_uniform(key, shape_hwio):
    """He-uniform as in the PyTorch code: bound = sqrt(3) * sqrt(2 / fan_in)."""
    kh, kw, cin, _ = shape_hwio
    fan_in = kh * kw * cin
    bound = math.sqrt(3.0) * math.sqrt(2.0 / fan_in)
    return jax.random.uniform(key, shape_hwio, jnp.float32, -bound, bound)


def init_basic_block_params(key, cin, cout, fs=3):
    k1, k2, k3 = jax.random.split(key, 3)
    return {
        # conv weights in HWIO layout (kh, kw, in, out)
        "w1": kaiming_uniform(k1, (fs, fs, cin, cout)),
        "b1": jnp.zeros((cout,), jnp.float32),
        "w2": kaiming_uniform(k2, (fs, fs, cout, cout)),
        "b2": jnp.zeros((cout,), jnp.float32),
        "weq": kaiming_uniform(k3, (1, 1, cin, cout)).reshape(cin, cout),
        "beq": jnp.zeros((cout,), jnp.float32),
        # BatchNorm: weight filled with 1, bias zeroed (as in __init__)
        "g1": jnp.ones((cin,), jnp.float32),
        "be1": jnp.zeros((cin,), jnp.float32),
        "g2": jnp.ones((cout,), jnp.float32),
        "be2": jnp.zeros((cout,), jnp.float32),
    }


# ------------------------- pure-JAX reference for validation -------------------------
def _bn_relu_ref(x, gamma, beta):
    mean = jnp.mean(x, axis=(0, 1, 2), keepdims=True)
    var = jnp.mean((x - mean) ** 2, axis=(0, 1, 2), keepdims=True)
    xn = (x - mean) * jax.lax.rsqrt(var + EPS) * gamma.reshape(1, 1, 1, -1) \
        + beta.reshape(1, 1, 1, -1)
    return jnp.maximum(xn, 0.0)


def _conv_same_ref(x, w, b, dilation):
    fs = w.shape[0]
    p = (fs + (fs - 1) * (dilation - 1) - 1) // 2
    out = jax.lax.conv_general_dilated(
        x, w, window_strides=(1, 1), padding=[(p, p), (p, p)],
        rhs_dilation=(dilation, dilation),
        dimension_numbers=("NHWC", "HWIO", "NHWC"),
        preferred_element_type=jnp.float32)
    return out + b.reshape(1, 1, 1, -1)


def basic_block_reference(x_nchw, params, *, filter_size=3, dilation=1):
    x = jnp.transpose(x_nchw, (0, 2, 3, 1)).astype(jnp.float32)
    cin = x.shape[-1]
    cout = params["w2"].shape[-1]
    h = _conv_same_ref(_bn_relu_ref(x, params["g1"], params["be1"]),
                       params["w1"], params["b1"], dilation)
    h = _conv_same_ref(_bn_relu_ref(h, params["g2"], params["be2"]),
                       params["w2"], params["b2"], 1)
    if cin != cout:
        xres = jnp.einsum("nhwc,cd->nhwd", x, params["weq"]) \
            + params["beq"].reshape(1, 1, 1, -1)
    else:
        xres = x
    return jnp.transpose(xres + h, (0, 3, 1, 2))


if __name__ == "__main__":
    key = jax.random.PRNGKey(0)

    # Conv matmuls + bf16 intermediate storage -> 3e-2 tolerance.
    def check(N, Cin, Cout, H, W, fs, dilation, seed):
        kx, kp = jax.random.split(jax.random.PRNGKey(seed))
        x = jax.random.normal(kx, (N, Cin, H, W), jnp.float32)   # PyTorch NCHW input
        params = init_basic_block_params(kp, Cin, Cout, fs=fs)
        out = jax.block_until_ready(
            basic_block_forward(x, params, filter_size=fs, dilation=dilation))
        ref = jax.block_until_ready(
            basic_block_reference(x, params, filter_size=fs, dilation=dilation))
        assert out.shape == (N, Cout, H, W), out.shape
        assert jnp.allclose(out, ref, atol=3e-2, rtol=3e-2), \
            float(jnp.max(jnp.abs(out - ref)))

    # primary config: channel-changing residual (1x1 conv), dilation 1
    check(N=2, Cin=4, Cout=8, H=16, W=16, fs=3, dilation=1, seed=0)
    # identity-residual + dilated unit-1 conv path
    check(N=2, Cin=8, Cout=8, H=16, W=16, fs=3, dilation=2, seed=1)

    print("KERNEL_OK")
</pallas_src>

<mosaic_0001>
module attributes {stable_mosaic.version = 11 : i64} {
  func.func @_stats_kernel(%arg0: i32, %arg1: memref<32x64xf32, #tpu.memory_space<vmem>>, %arg2: memref<1x2x64xf32, #tpu.memory_space<vmem>>) attributes {dimension_semantics = [#tpu.dimension_semantics<parallel>], iteration_bounds = array<i64: 1>, scalar_prefetch = 0 : i64, scratch_operands = 0 : i64, tpu.core_type = #tpu.core_type<tc>, window_params = [{transform_indices = @transform_0, window_bounds = array<i64: 32, 64>}, {transform_indices = @transform_1, window_bounds = array<i64: 1, 2, 64>}]} {
    %c0 = arith.constant 0 : index
    %c0_0 = arith.constant 0 : index
    %0 = vector.load %arg1[%c0, %c0_0] : memref<32x64xf32, #tpu.memory_space<vmem>>, vector<32x64xf32>
    %cst = arith.constant dense<0.000000e+00> : vector<64xf32>
    %1 = vector.multi_reduction <add>, %0, %cst [0] : vector<32x64xf32> to vector<64xf32>
    %2 = vector.shape_cast %1 : vector<64xf32> to vector<1x64xf32>
    %c0_1 = arith.constant 0 : index
    %c0_2 = arith.constant 0 : index
    %c0_3 = arith.constant 0 : index
    %3 = vector.load %arg2[%c0_1, %c0_2, %c0_3] : memref<1x2x64xf32, #tpu.memory_space<vmem>>, vector<1x1x64xf32>
    %4 = vector.shape_cast %3 : vector<1x1x64xf32> to vector<1x64xf32>
    %5 = vector.shape_cast %2 : vector<1x64xf32> to vector<1x1x64xf32>
    tpu.vector_store %arg2[%c0_1, %c0_2, %c0_3], %5 {strides = array<i32>} : memref<1x2x64xf32, #tpu.memory_space<vmem>>, vector<1x1x64xf32>,
    %6 = arith.mulf %0, %0 : vector<32x64xf32>
    %cst_4 = arith.constant dense<0.000000e+00> : vector<64xf32>
    %7 = vector.multi_reduction <add>, %6, %cst_4 [0] : vector<32x64xf32> to vector<64xf32>
    %8 = vector.shape_cast %7 : vector<64xf32> to vector<1x64xf32>
    %c0_5 = arith.constant 0 : index
    %c1 = arith.constant 1 : index
    %c0_6 = arith.constant 0 : index
    %9 = vector.load %arg2[%c0_5, %c1, %c0_6] : memref<1x2x64xf32, #tpu.memory_space<vmem>>, vector<1x1x64xf32>
    %10 = vector.shape_cast %9 : vector<1x1x64xf32> to vector<1x64xf32>
    %11 = vector.shape_cast %8 : vector<1x64xf32> to vector<1x1x64xf32>
    tpu.vector_store %arg2[%c0_5, %c1, %c0_6], %11 {strides = array<i32>} : memref<1x2x64xf32, #tpu.memory_space<vmem>>, vector<1x1x64xf32>,
    return
  }
  func.func @transform_0(%arg0: i32) -> (i32, i32) {
    %c0_i32 = arith.constant 0 : i32
    %c0_i32_0 = arith.constant 0 : i32
    return %arg0, %c0_i32 : i32, i32
  }
  func.func @transform_1(%arg0: i32) -> (i32, i32, i32) {
    %c0_i32 = arith.constant 0 : i32
    %c0_i32_0 = arith.constant 0 : i32
    %c0_i32_1 = arith.constant 0 : i32
    return %arg0, %c0_i32, %c0_i32_0 : i32, i32, i32
  }
}

</mosaic_0001>

<bundles_post_ra>
// kernel: tpu_custom_call.1
= control target key start
LH: loop header
LB: loop body
LE: loop exit
PB: predicated region body
PF: predicated region fallthrough
CT: control target
= control target key end

     0   :  { %6 = vsyncpa [#allocation3], 0  ;;  %s174_s0 = inlined_call_operand.hbm [shape: f32[32,64], index: 0, kind: input, shape index: {}]   ;;  %s175_s1 = inlined_call_operand.hbm [shape: f32[1,2,64], index: 1, kind: output, shape index: {}]  }
   0x1   :  { %7 = vsyncpa [#allocation4], 0  ;;  %s128_s6 = smov [#allocation2]   ;;  %s80_s10 = scalar_lea.hbm %s174_s0, 512 }
   0x2   :  { %s13_s7 = sshll.u32 %s128_s6, 4  ;;  %p81_p0 = scmp.ne.s32.totalorder %s174_s0, %s80_s10  ;;  %s14_s7 = int_to_ptr.vmem [resolvable:$true] %s13_s7 }
   0x3   :  { %p84_p1 = scmp.lt.u32.totalorder %s80_s10, %s174_s0 }
   0x5   :  { %p86_p2 = pnand %p84_p1, %p81_p0 }
   0x7   :  { %89 = shalt.err (!%p86_p2)
}
   0x8   :  { %s90_s15 = scalar_lea.vmem %s14_s7, 512  ;;  %p95_p4 = scmp.lt.s32.totalorder %s14_s7, %s14_s7 }
   0x9   :  { %p91_p3 = scmp.ne.s32.totalorder %s14_s7, %s90_s15  ;;  %p96_p5 = scmp.lt.s32.totalorder %s90_s15, %s90_s15 }
   0xb   :  { %p97_p6 = por %p96_p5, %p95_p4 }
   0xd   :  { %p98_p7 = pnand %p97_p6, %p91_p3 }
   0xf   :  { %101 = shalt.err (!%p98_p7)
}
  0x10   :  { %s129_s16 = smov 128   ;;  %s130_s17 = smov 8  }
  0x11   :  { %19 = dma.hbm_to_vmem [thread:$0]  %s174_s0, 512, %s14_s7, [#allocation3], %s129_s16, %s129_s16, %s130_s17  }
  0x12   :  { %124 = dma.done.wait [#allocation3], 512  }
  0x13   :  { %125 = vsyncadd [#allocation3], 4294966784  ;;  %vm27_vm0 = vcmask 523264   ;;  %v23_v0 = vld [vmem:[#allocation2] sm:$0xff]  ;;  %v24_v1 = vld [vmem:[#allocation2 + $0x8] sm:$0xff]  ;;  %vm41_vm1 = vcmask 516096  }
  0x14   :  { %v25_v2 = vld [vmem:[#allocation2 + $0x10] sm:$0xff]  ;;  %v26_v3 = vld [vmem:[#allocation2 + $0x18] sm:$0xff]  ;;  %v28_v4 = vsel %vm27_vm0, %v23_v0, 0.0  ;;  %v29_v5 = vsel %vm27_vm0, %v24_v1, 0.0  ;;  %v43_v7 = vmul.f32 %v23_v0, %v23_v0  ;;  %v44_v9 = vmul.f32 %v24_v1, %v24_v1  ;;  %s131_s0 = smov [#allocation5]  }
  0x15   :  { %v31_v6 = vsel %vm27_vm0, %v25_v2, 0.0  ;;  %v30_v8 = vadd.f32 %v29_v5, %v28_v4  ;;  %v45_v10 = vmul.f32 %v25_v2, %v25_v2  ;;  %v33_v11 = vsel %vm27_vm0, %v26_v3, 0.0  ;;  %s67_s20 = sshll.u32 %s131_s0, 4  ;;  %s68_s20 = int_to_ptr.vmem [resolvable:$true] %s67_s20 }
  0x16   :  { %v46_v12 = vmul.f32 %v26_v3, %v26_v3  ;;  %v47_v13 = vsel %vm27_vm0, %v43_v7, 0.0  ;;  %v48_v15 = vsel %vm27_vm0, %v44_v9, 0.0  ;;  %s102_s21 = scalar_lea.vmem %s68_s20, 32  ;;  %p107_p9 = scmp.lt.s32.totalorder %s68_s20, %s68_s20 }
  0x17   :  { %v32_v14 = vadd.f32 %v31_v6, %v30_v8  ;;  %v50_v16 = vsel %vm27_vm0, %v45_v10, 0.0  ;;  %v49_v17 = vadd.f32 %v48_v15, %v47_v13  ;;  %p103_p8 = scmp.ne.s32.totalorder %s68_s20, %s102_s21  ;;  %p108_p10 = scmp.lt.s32.totalorder %s102_s21, %s102_s21 }
  0x18   :  { %v52_v19 = vsel %vm27_vm0, %v46_v12, 0.0 }
  0x19   :  { %v34_v18 = vadd.f32 %v33_v11, %v32_v14  ;;  %v51_v20 = vadd.f32 %v50_v16, %v49_v17  ;;  %p109_p11 = por %p108_p10, %p107_p9 }
  0x1b   :  { %v35_v21 = vrot.slane %v34_v18, 4  ;;  %v53_v22 = vadd.f32 %v52_v19, %v51_v20  ;;  %p110_p12 = pnand %p109_p11, %p103_p8 }
  0x1d   :  { %v36_v23 = vadd.f32 %v35_v21, %v34_v18  ;;  %v54_v24 = vrot.slane %v53_v22, 4 }
  0x1f   :  { %v37_v25 = vrot.slane %v36_v23, 2  ;;  %v55_v26 = vadd.f32 %v54_v24, %v53_v22 }
  0x21   :  { %v38_v27 = vadd.f32 %v37_v25, %v36_v23  ;;  %v56_v28 = vrot.slane %v55_v26, 2 }
  0x23   :  { %v39_v29 = vrot.slane %v38_v27, 1  ;;  %v57_v30 = vadd.f32 %v56_v28, %v55_v26 }
  0x25   :  { %v40_v31 = vadd.f32 %v39_v29, %v38_v27  ;;  %v58_v32 = vrot.slane %v57_v30, 1 }
  0x27   :  { %42 = vst.msk [vmem:[#allocation5] sm:$0x1] %vm41_vm1, %v40_v31  ;;  %v59_v33 = vadd.f32 %v58_v32, %v57_v30 }
  0x29   :  { %60 = vst.msk [vmem:[#allocation5 + $0x1] sm:$0x1] %vm41_vm1, %v59_v33 }
  0x2a   :  { %113 = shalt.err (!%p110_p12)
}
  0x2b   :  { %s114_s24 = scalar_lea.hbm %s175_s1, 32 }
  0x2c   :  { %p115_p13 = scmp.ne.s32.totalorder %s175_s1, %s114_s24  ;;  %p118_p0 = scmp.lt.u32.totalorder %s114_s24, %s175_s1 }
  0x2e   :  { %p120_p1 = pnand %p118_p0, %p115_p13 }
  0x30   :  { %123 = shalt.err (!%p120_p1)
}
  0x31   :  { %70 = dma.vmem_to_hbm [thread:$0]  %s68_s20, 32, %s175_s1, [#allocation4]  }
  0x32   :  { %126 = dma.done.wait [#allocation4], 32  }
  0x33   :  { %127 = vsyncadd [#allocation4], 4294967264 }
  0x34   :  { %74 = vsyncpa [#allocation3], 1 }
  0x35   :  { %75 = vsyncpa [#allocation4], 1 }

</bundles_post_ra>
